<compile_context>
chip_gen: v7x
topology: tpu7x:2x2x1
jax: 0.10.0
libtpu: 0.0.40
codegen_flags: <defaults>
</compile_context>

<pallas_src>
import functools

import jax
import jax.numpy as jnp
from jax.experimental import pallas as pl
from jax.experimental.pallas import tpu as pltpu

LANE = 128
MAX_TILE_ROWS = 4096          # 4096 x 128 x 4B = 2 MiB per stream per buffer
_SP_CLAMP = 27.631021         # -log(1e-12): mirrors reference log(p + eps)


def _round_up(x, m):
    return (x + m - 1) // m * m


def _sublane(dtype):
    # Min sublane packing per dtype: 8 (f32), 16 (bf16/f16), 32 (int8/bool).
    return max(8, 32 // jnp.dtype(dtype).itemsize)


def _sens_loss_kernel(x_ref, m_ref, out_ref, *, gamma0, gamma1, tile_rows,
                      needs_mask, tail_valid):
    """Per-tile elementwise loss + (8, LANE) partial-sum reduction.

    x_ref, m_ref : (tile_rows, LANE) tiles of logits / mask (native dtype)
    out_ref      : (8, LANE) f32 partial sums for this grid block
    """
    x = x_ref[...].astype(jnp.float32)
    m = m_ref[...].astype(jnp.float32)

    # Stable softplus: softplus(x) = max(x,0) + log1p(exp(-|x|))
    #   sp_pos = softplus( x) = -log(1 - p)   (p = sigmoid(x))
    #   sp_neg = softplus(-x) = -log(p) = sp_pos - x
    sp_pos = jnp.maximum(x, 0.0) + jnp.log1p(jnp.exp(-jnp.abs(x)))
    sp_neg = sp_pos - x
    # Saturate like the reference's log(p + eps)/log(1 - p + eps); also keeps
    # w = exp(gamma * sp) finite for extreme logits (reference NaNs there).
    sp_pos = jnp.minimum(sp_pos, jnp.float32(_SP_CLAMP))
    sp_neg = jnp.minimum(sp_neg, jnp.float32(_SP_CLAMP))

    # w_pos = (1-p)^(-g0) = exp(g0*sp_pos);  w_neg = p^(-g1) = exp(g1*sp_neg)
    if gamma0 != 0.0:
        w_pos = jnp.exp(jnp.float32(gamma0) * sp_pos)
    else:
        w_pos = jnp.float32(1.0)
    if gamma1 != 0.0:
        w_neg = jnp.exp(jnp.float32(gamma1) * sp_neg)
    else:
        w_neg = jnp.float32(1.0)

    # loss_pos = -m*w_pos*log(p)       =  m    * w_pos * sp_neg
    # loss_neg = -(1-m)*w_neg*log(1-p) = (1-m) * w_neg * sp_pos
    loss = m * w_pos * sp_neg + (1.0 - m) * w_neg * sp_pos

    def partial_sum(vals):
        # (tile_rows, 128) -> (tile_rows//8, 8, 128), sum over vreg-aligned
        # groups: pure VALU vreg adds + aligned unmasked (8,128) store.
        return vals.reshape(tile_rows // 8, 8, LANE).sum(axis=0)

    if needs_mask:
        is_last = pl.program_id(0) == pl.num_programs(0) - 1

        @pl.when(jnp.logical_not(is_last))
        def _():
            out_ref[...] = partial_sum(loss)

        @pl.when(is_last)
        def _():
            # Block-local element index (< tile_rows*128), so no i32 overflow.
            row = jax.lax.broadcasted_iota(jnp.int32, loss.shape, 0)
            lane = jax.lax.broadcasted_iota(jnp.int32, loss.shape, 1)
            elem = row * LANE + lane
            out_ref[...] = partial_sum(
                jnp.where(elem < tail_valid, loss, 0.0))
    else:
        out_ref[...] = partial_sum(loss)


def sensitivity_loss(pred, mask, weights=None, *, gamma0=0.5, gamma1=0.0,
                     max_tile_rows=MAX_TILE_ROWS):
    """JAX/Pallas equivalent of SensitivityLoss.forward.

    pred, mask: [B, 1, H, W] logits / binary mask (any float/bool-ish dtype).
    `weights` is accepted for API parity but unused, as in the reference.
    """
    assert pred.shape == mask.shape, "pred and mask should have the same shape."
    numel = pred.size
    eps = 1e-12

    flat_p = pred.reshape(-1)
    flat_m = mask.reshape(-1)

    # Pad only to a lane-width multiple (usually a no-op for image shapes);
    # pad / OOB-tail elements are masked out on the last block in-kernel.
    pad = (-numel) % LANE
    if pad:
        flat_p = jnp.pad(flat_p, (0, pad))
        flat_m = jnp.pad(flat_m, (0, pad))
    rows = (numel + pad) // LANE

    p2 = flat_p.reshape(rows, LANE)
    m2 = flat_m.reshape(rows, LANE)

    sub = max(_sublane(pred.dtype), _sublane(mask.dtype))
    # Large tiles to amortize per-grid-step overhead, but cap near rows/2 so
    # big inputs get >= 2 blocks for v7x megacore to shard across its 2 TCs.
    half = _round_up(max((rows + 1) // 2, 1), sub)
    tile_rows = int(min(_round_up(max_tile_rows, sub), half))
    num_blocks = (rows + tile_rows - 1) // tile_rows
    needs_mask = (num_blocks * tile_rows * LANE) != numel
    tail_valid = numel - (num_blocks - 1) * tile_rows * LANE

    kernel = functools.partial(
        _sens_loss_kernel,
        gamma0=float(gamma0),
        gamma1=float(gamma1),
        tile_rows=tile_rows,
        needs_mask=bool(needs_mask),
        tail_valid=int(tail_valid),
    )

    # Explicit scoped-VMEM budget: double-buffered input tiles + f32
    # intermediates + double-buffered (8,128) output, with headroom.
    in_item = jnp.dtype(pred.dtype).itemsize + jnp.dtype(mask.dtype).itemsize
    vmem_est = (2 * tile_rows * LANE * in_item
                + 6 * tile_rows * LANE * 4
                + 2 * 8 * LANE * 4)
    vmem_limit = int(min(max(int(vmem_est * 1.5), 16 << 20), 44 << 20))

    cost = pl.CostEstimate(
        flops=12 * numel,
        transcendentals=3 * numel,
        bytes_accessed=numel * in_item + num_blocks * 8 * LANE * 4,
    )

    partials = pl.pallas_call(
        kernel,
        out_shape=jax.ShapeDtypeStruct((num_blocks * 8, LANE), jnp.float32),
        grid_spec=pltpu.PrefetchScalarGridSpec(
            num_scalar_prefetch=0,
            grid=(num_blocks,),
            in_specs=[
                pl.BlockSpec((tile_rows, LANE), lambda i: (i, 0)),
                pl.BlockSpec((tile_rows, LANE), lambda i: (i, 0)),
            ],
            out_specs=pl.BlockSpec((8, LANE), lambda i: (i, 0)),
        ),
        compiler_params=pltpu.CompilerParams(
            dimension_semantics=("parallel",),
            vmem_limit_bytes=vmem_limit,
        ),
        cost_estimate=cost,
    )(p2, m2)

    return jnp.sum(partials) / (numel + eps)


def _reference_loss(pred, mask, gamma0=0.5, gamma1=0.0):
    """Pure-JAX reference mirroring the PyTorch forward (for sanity check)."""
    eps = 1e-12
    p = jax.nn.sigmoid(pred.astype(jnp.float32))
    m = mask.astype(jnp.float32)
    w_pos = (1.0 - p) ** (-gamma0)
    w_neg = p ** (-gamma1)
    loss_pos = -m * w_pos * jnp.log(p + eps)
    loss_neg = -(1.0 - m) * w_neg * jnp.log(1.0 - p + eps)
    return (jnp.sum(loss_pos) + jnp.sum(loss_neg)) / (mask.size + eps)


if __name__ == "__main__":
    key = jax.random.PRNGKey(0)
    k1, k2 = jax.random.split(key)

    B, C, H, W = 2, 1, 16, 16  # pred/mask shape [B, 1, H, W] per the module
    pred = jax.random.normal(k1, (B, C, H, W), dtype=jnp.float32)
    mask = (jax.random.uniform(k2, (B, C, H, W)) > 0.5).astype(jnp.float32)

    loss = jax.block_until_ready(sensitivity_loss(pred, mask))
    ref = jax.block_until_ready(_reference_loss(pred, mask))
    assert jnp.allclose(loss, ref, rtol=1e-5, atol=1e-5), (loss, ref)

    print("KERNEL_OK")
</pallas_src>

<mosaic_0001>
module attributes {stable_mosaic.version = 11 : i64} {
  func.func @_sens_loss_kernel(%arg0: i32, %arg1: memref<8x128xf32, #tpu.memory_space<vmem>>, %arg2: memref<8x128xf32, #tpu.memory_space<vmem>>, %arg3: memref<8x128xf32, #tpu.memory_space<vmem>>) attributes {dimension_semantics = [#tpu.dimension_semantics<parallel>], iteration_bounds = array<i64: 1>, scalar_prefetch = 0 : i64, scratch_operands = 0 : i64, tpu.core_type = #tpu.core_type<tc>, window_params = [{transform_indices = @transform_0, window_bounds = array<i64: 8, 128>}, {transform_indices = @transform_1, window_bounds = array<i64: 8, 128>}, {transform_indices = @transform_2, window_bounds = array<i64: 8, 128>}]} {
    %c0 = arith.constant 0 : index
    %c0_0 = arith.constant 0 : index
    %0 = vector.load %arg1[%c0, %c0_0] : memref<8x128xf32, #tpu.memory_space<vmem>>, vector<8x128xf32>
    %c0_1 = arith.constant 0 : index
    %c0_2 = arith.constant 0 : index
    %1 = vector.load %arg2[%c0_1, %c0_2] : memref<8x128xf32, #tpu.memory_space<vmem>>, vector<8x128xf32>
    %cst = arith.constant 0.000000e+00 : f32
    %2 = vector.broadcast %cst : f32 to vector<8x128xf32>
    %3 = arith.maximumf %0, %2 : vector<8x128xf32>
    %4 = math.absf %0 : vector<8x128xf32>
    %cst_3 = arith.constant 0.000000e+00 : f32
    %5 = vector.broadcast %cst_3 : f32 to vector<8x128xf32>
    %6 = arith.subf %5, %4 : vector<8x128xf32>
    %7 = math.exp %6 : vector<8x128xf32>
    %8 = math.log1p %7 : vector<8x128xf32>
    %9 = arith.addf %3, %8 : vector<8x128xf32>
    %10 = arith.subf %9, %0 : vector<8x128xf32>
    %cst_4 = arith.constant 27.6310215 : f32
    %11 = vector.broadcast %cst_4 : f32 to vector<8x128xf32>
    %12 = arith.minimumf %9, %11 : vector<8x128xf32>
    %cst_5 = arith.constant 27.6310215 : f32
    %13 = vector.broadcast %cst_5 : f32 to vector<8x128xf32>
    %14 = arith.minimumf %10, %13 : vector<8x128xf32>
    %cst_6 = arith.constant 5.000000e-01 : f32
    %15 = vector.broadcast %cst_6 : f32 to vector<8x128xf32>
    %16 = arith.mulf %15, %12 : vector<8x128xf32>
    %17 = math.exp %16 : vector<8x128xf32>
    %18 = arith.mulf %1, %17 : vector<8x128xf32>
    %19 = arith.mulf %18, %14 : vector<8x128xf32>
    %cst_7 = arith.constant 1.000000e+00 : f32
    %20 = vector.broadcast %cst_7 : f32 to vector<8x128xf32>
    %21 = arith.subf %20, %1 : vector<8x128xf32>
    %cst_8 = arith.constant 1.000000e+00 : f32
    %22 = vector.broadcast %cst_8 : f32 to vector<8x128xf32>
    %23 = arith.mulf %21, %22 : vector<8x128xf32>
    %24 = arith.mulf %23, %12 : vector<8x128xf32>
    %25 = arith.addf %19, %24 : vector<8x128xf32>
    %c0_i32 = arith.constant 0 : i32
    %26 = arith.cmpi eq, %arg0, %c0_i32 : i32
    %true = arith.constant true
    %27 = arith.xori %26, %true : i1
    %28 = arith.extui %27 : i1 to i32
    %c0_i32_9 = arith.constant 0 : i32
    %29 = arith.cmpi ne, %28, %c0_i32_9 : i32
    scf.if %29 {
      %32 = vector.shape_cast %25 : vector<8x128xf32> to vector<1x8x128xf32>
      %cst_11 = arith.constant dense<0.000000e+00> : vector<8x128xf32>
      %33 = vector.multi_reduction <add>, %32, %cst_11 [0] : vector<1x8x128xf32> to vector<8x128xf32>
      %c0_12 = arith.constant 0 : index
      %c0_13 = arith.constant 0 : index
      %34 = vector.load %arg3[%c0_12, %c0_13] : memref<8x128xf32, #tpu.memory_space<vmem>>, vector<8x128xf32>
      tpu.vector_store %arg3[%c0_12, %c0_13], %33 {strides = array<i32>} : memref<8x128xf32, #tpu.memory_space<vmem>>, vector<8x128xf32>,
    } else {
    }
    %30 = arith.extui %26 : i1 to i32
    %c0_i32_10 = arith.constant 0 : i32
    %31 = arith.cmpi ne, %30, %c0_i32_10 : i32
    scf.if %31 {
      %32 = tpu.iota {dimensions = array<i32: 0>} : vector<8x128xi32>
      %33 = tpu.iota {dimensions = array<i32: 1>} : vector<8x128xi32>
      %c128_i32 = arith.constant 128 : i32
      %34 = vector.broadcast %c128_i32 : i32 to vector<8x128xi32>
      %35 = arith.muli %32, %34 : vector<8x128xi32>
      %36 = arith.addi %35, %33 : vector<8x128xi32>
      %c512_i32 = arith.constant 512 : i32
      %37 = vector.broadcast %c512_i32 : i32 to vector<8x128xi32>
      %38 = arith.cmpi slt, %36, %37 : vector<8x128xi32>
      %cst_11 = arith.constant 0.000000e+00 : f32
      %39 = vector.broadcast %cst_11 : f32 to vector<8x128xf32>
      %40 = arith.select %38, %25, %39 : vector<8x128xi1>, vector<8x128xf32>
      %41 = vector.shape_cast %40 : vector<8x128xf32> to vector<1x8x128xf32>
      %cst_12 = arith.constant dense<0.000000e+00> : vector<8x128xf32>
      %42 = vector.multi_reduction <add>, %41, %cst_12 [0] : vector<1x8x128xf32> to vector<8x128xf32>
      %c0_13 = arith.constant 0 : index
      %c0_14 = arith.constant 0 : index
      %43 = vector.load %arg3[%c0_13, %c0_14] : memref<8x128xf32, #tpu.memory_space<vmem>>, vector<8x128xf32>
      tpu.vector_store %arg3[%c0_13, %c0_14], %42 {strides = array<i32>} : memref<8x128xf32, #tpu.memory_space<vmem>>, vector<8x128xf32>,
    } else {
    }
    return
  }
  func.func @transform_0(%arg0: i32) -> (i32, i32) {
    %c0_i32 = arith.constant 0 : i32
    %c0_i32_0 = arith.constant 0 : i32
    return %arg0, %c0_i32 : i32, i32
  }
  func.func @transform_1(%arg0: i32) -> (i32, i32) {
    %c0_i32 = arith.constant 0 : i32
    %c0_i32_0 = arith.constant 0 : i32
    return %arg0, %c0_i32 : i32, i32
  }
  func.func @transform_2(%arg0: i32) -> (i32, i32) {
    %c0_i32 = arith.constant 0 : i32
    %c0_i32_0 = arith.constant 0 : i32
    return %arg0, %c0_i32 : i32, i32
  }
}

</mosaic_0001>

<bundles_post_ra>
// kernel: tpu_custom_call.1
= control target key start
LH: loop header
LB: loop body
LE: loop exit
PB: predicated region body
PF: predicated region fallthrough
CT: control target
= control target key end

     0   :  { %7 = vsyncpa [#allocation3], 0  ;;  %s243_s0 = inlined_call_operand.hbm [shape: f32[4,128], index: 0, kind: input, shape index: {}]   ;;  %s244_s1 = inlined_call_operand.hbm [shape: f32[4,128], index: 1, kind: input, shape index: {}]   ;;  %s245_s2 = inlined_call_operand.hbm [shape: f32[8,128], index: 2, kind: output, shape index: {}]  }
   0x1   :  { %8 = vsyncpa [#allocation6], 0 }
   0x2   :  { %9 = vsyncpa [#allocation4], 0 }
   0x3   :  { %14 = vsyncadd [#allocation3], 64  ;;  %s187_s9 = smov [#allocation2]   ;;  %s115_s13 = scalar_lea.hbm %s243_s0, 64 }
   0x4   :  { %s15_s10 = sshll.u32 %s187_s9, 4  ;;  %p116_p0 = scmp.ne.s32.totalorder %s243_s0, %s115_s13  ;;  %s16_s10 = int_to_ptr.vmem [resolvable:$true] %s15_s10 }
   0x5   :  { %p119_p1 = scmp.lt.u32.totalorder %s115_s13, %s243_s0 }
   0x7   :  { %p121_p2 = pnand %p119_p1, %p116_p0 }
   0x9   :  { %124 = shalt.err (!%p121_p2)
}
   0xa   :  { %s125_s18 = scalar_lea.vmem %s16_s10, 64  ;;  %s129_s19 = scalar_lea.vmem %s16_s10, 128 }
   0xb   :  { %p126_p3 = scmp.ne.s32.totalorder %s16_s10, %s125_s18  ;;  %p130_p4 = scmp.lt.s32.totalorder %s16_s10, %s16_s10 }
   0xc   :  { %p131_p5 = scmp.lt.s32.totalorder %s129_s19, %s125_s18 }
   0xe   :  { %p132_p6 = por %p131_p5, %p130_p4 }
  0x10   :  { %p133_p7 = pnand %p132_p6, %p126_p3 }
  0x12   :  { %136 = shalt.err (!%p133_p7)
}
  0x13   :  { %s188_s20 = smov 64   ;;  %s189_s21 = smov 4  }
  0x14   :  { %21 = dma.hbm_to_vmem [thread:$0]  %s243_s0, 64, %s16_s10, [#allocation3], %s188_s20, %s188_s20, %s189_s21  }
  0x15   :  { %26 = vsyncadd [#allocation6], 64  ;;  %s190_s24 = smov [#allocation5]   ;;  %s137_s28 = scalar_lea.hbm %s244_s1, 64 }
  0x16   :  { %s27_s25 = sshll.u32 %s190_s24, 4  ;;  %p138_p8 = scmp.ne.s32.totalorder %s244_s1, %s137_s28  ;;  %s28_s25 = int_to_ptr.vmem [resolvable:$true] %s27_s25 }
  0x17   :  { %p141_p9 = scmp.lt.u32.totalorder %s137_s28, %s244_s1 }
  0x19   :  { %p143_p10 = pnand %p141_p9, %p138_p8 }
  0x1b   :  { %146 = shalt.err (!%p143_p10)
}
  0x1c   :  { %s147_s5 = scalar_lea.vmem %s28_s25, 64  ;;  %s151_s0 = scalar_lea.vmem %s28_s25, 128 }
  0x1d   :  { %p148_p11 = scmp.ne.s32.totalorder %s28_s25, %s147_s5  ;;  %p152_p12 = scmp.lt.s32.totalorder %s28_s25, %s28_s25 }
  0x1e   :  { %p153_p13 = scmp.lt.s32.totalorder %s151_s0, %s147_s5 }
  0x20   :  { %p154_p0 = por %p153_p13, %p152_p12 }
  0x22   :  { %p155_p1 = pnand %p154_p0, %p148_p11 }
  0x24   :  { %158 = shalt.err (!%p155_p1)
}
  0x25   :  { %33 = dma.hbm_to_vmem [thread:$0]  %s244_s1, 64, %s28_s25, [#allocation6], %s188_s20, %s188_s20, %s189_s21  }
  0x26   :  { %181 = dma.done.wait [#allocation3], 128  }
  0x27   :  { %182 = vsyncadd [#allocation3], 4294967168 }
  0x28   :  { %183 = dma.done.wait [#allocation6], 128  }
  0x29   :  { %184 = vsyncadd [#allocation6], 4294967168  ;;  %v40_v0 = vld [vmem:[#allocation2] sm:$0xff]  ;;  %v78_v18 = vlaneseq  ;;  %v41_v20 = vld [vmem:[#allocation5] sm:$0xff]  ;;  %s191_s1 = smov [#allocation7]  }
  0x2a   :  { %v43_v1 = vand.u32 2147483647, %v40_v0  ;;  %v42_v11 = vmax.f32 %v40_v0, 0.0  ;;  %v65_v24 = vsub.f32 1.0, %v41_v20  ;;  %s94_s8 = sshll.u32 %s191_s1, 4  ;;  %s95_s8 = int_to_ptr.vmem [resolvable:$true] %s94_s8 }
  0x2b   :  { %v79_v19 = vshrl.u32 %v78_v18, 7  ;;  %v81_v22 = vand.u32 127, %v78_v18  ;;  %s159_s9 = scalar_lea.vmem %s95_s8, 128  ;;  %p164_p3 = scmp.lt.s32.totalorder %s95_s8, %s95_s8 }
  0x2c   :  { %v44_v2 = vsub.f32 0.0, %v43_v1  ;;  %p160_p2 = scmp.ne.s32.totalorder %s95_s8, %s159_s9  ;;  %p165_p4 = scmp.lt.s32.totalorder %s159_s9, %s159_s9 }
  0x2d   :  { %v82_v23 = vmul.u32 128, %v79_v19 }
  0x2e   :  { %v45_v3 = vmul.f32 1.442695, %v44_v2  ;;  %p166_p5 = por %p165_p4, %p164_p3 }
  0x2f   :  { %v83_v27 = vadd.s32 %v82_v23, %v81_v22 }
  0x30   :  { %109 = vpow2.f32 %v45_v3  ;;  %p167_p6 = pnand %p166_p5, %p160_p2 }
  0x31   :  { %vm84_vm1 = vcmp.lt.s32.totalorder %v83_v27, 512 }
  0x3a   :  { %v110_v4 = vpop.eup %109 }
  0x3b   :  { %v47_v5 = vadd.f32 1.0, %v110_v4  ;;  %v50_v6 = vmul.f32 -0.5, %v110_v4  ;;  %v53_v8 = vand.u32 2147483647, %v110_v4 }
  0x3d   :  { %111 = vlog2.f32 %v47_v5  ;;  %v51_v7 = vadd.f32 1.0, %v50_v6  ;;  %vm54_vm0 = vcmp.lt.f32.partialorder %v53_v8, 0.0004427343 }
  0x3f   :  { %v52_v9 = vmul.f32 %v110_v4, %v51_v7 }
  0x47   :  { %v112_v10 = vpop.eup %111 }
  0x48   :  { %v49_v12 = vmul.f32 0.6931472, %v112_v10 }
  0x4a   :  { %v55_v13 = vsel %vm54_vm0, %v52_v9, %v49_v12 }
  0x4b   :  { %v56_v14 = vadd.f32 %v55_v13, %v42_v11 }
  0x4d   :  { %v58_v15 = vmin.f32 %v56_v14, 27.631021  ;;  %v57_v21 = vsub.f32 %v56_v14, %v40_v0 }
  0x4f   :  { %v60_v16 = vmul.f32 0.5, %v58_v15  ;;  %v59_v25 = vmin.f32 %v57_v21, 27.631021  ;;  %v66_v29 = vmul.f32 %v65_v24, %v58_v15 }
  0x51   :  { %v61_v17 = vmul.f32 1.442695, %v60_v16 }
  0x53   :  { %113 = vpow2.f32 %v61_v17 }
  0x5d   :  { %v114_v26 = vpop.eup %113 }
  0x5e   :  { %v63_v28 = vmul.f32 %v114_v26, %v41_v20 }
  0x60   :  { %v64_v30 = vmul.f32 %v63_v28, %v59_v25 }
  0x62   :  { %v67_v31 = vadd.f32 %v66_v29, %v64_v30 }
  0x64   :  { %v85_v32 = vsel %vm84_vm1, %v67_v31, 0.0 }
  0x65   :  { %87 = vst [vmem:[#allocation7] sm:$0xff] %v85_v32 }
  0x66   :  { %170 = shalt.err (!%p167_p6)
}
  0x67   :  { %s171_s12 = scalar_lea.hbm %s245_s2, 128 }
  0x68   :  { %p172_p7 = scmp.ne.s32.totalorder %s245_s2, %s171_s12  ;;  %p175_p8 = scmp.lt.u32.totalorder %s171_s12, %s245_s2 }
  0x6a   :  { %p177_p9 = pnand %p175_p8, %p172_p7 }
  0x6c   :  { %180 = shalt.err (!%p177_p9)
}
  0x6d   :  { %97 = dma.vmem_to_hbm [thread:$0]  %s95_s8, 128, %s245_s2, [#allocation4]  }
  0x6e   :  { %185 = dma.done.wait [#allocation4], 128  }
  0x6f   :  { %186 = vsyncadd [#allocation4], 4294967168 }
  0x70   :  { %101 = vsyncpa [#allocation3], 1 }
  0x71   :  { %102 = vsyncpa [#allocation6], 1 }
  0x72   :  { %103 = vsyncpa [#allocation4], 1 }

</bundles_post_ra>
